<compile_context>
chip_gen: v7x
topology: tpu7x:2x2x1
jax: 0.10.0
libtpu: 0.0.40
codegen_flags: <defaults>
</compile_context>

<pallas_src>
import functools

import jax
import jax.numpy as jnp
from jax.experimental import pallas as pl
from jax.experimental.pallas import tpu as pltpu

_LANE = 128


def _cdiv(a, b):
    return -(-a // b)


def _round_up(x, m):
    return ((x + m - 1) // m) * m


def _round_down(x, m):
    return (x // m) * m


def _budgets():
    """(per-input block budget bytes, vmem_limit_bytes), gated on physical VMEM."""
    vmem_bytes = None
    try:
        info = pltpu.get_tpu_info()
        for attr in ("vmem_capacity_bytes", "vmem_size_bytes", "vmem_bytes"):
            val = getattr(info, attr, None)
            if val:
                vmem_bytes = int(val)
                break
    except Exception:
        vmem_bytes = None
    if vmem_bytes is not None and vmem_bytes >= 100 * (1 << 20):
        # v5e / v6e: 128 MiB physical VMEM -> larger streaming blocks are safe.
        return 4 << 20, 64 << 20
    # v7x (64 MiB physical VMEM per TC) or unknown: stay conservative.
    return 2 << 20, 32 << 20


def _compute_dtype(p_dtype, t_dtype):
    """Use the bf16 VALU path only when both inputs are bf16 and the chip has one."""
    if p_dtype == jnp.bfloat16 and t_dtype == jnp.bfloat16:
        try:
            kind = jax.devices()[0].device_kind.lower()
        except Exception:
            kind = ""
        if ("v6" in kind) or ("v7" in kind):
            return jnp.bfloat16
    return jnp.float32


def _dice_kernel(p_ref, t_ref, num_ref, den_ref, *,
                 d_total, tile_cols, chunk_cols, n_chunks, kb_split,
                 p_exp, compute_dtype):
    """Grid: (sample-block i [parallel], split s [parallel], column-block k [reduction]).

    num_ref / den_ref are the resident per-sample (bn, acc_w) f32 accumulators;
    they are the kernel outputs (their block index is constant along k)."""
    s = pl.program_id(1)
    k = pl.program_id(2)

    @pl.when(k == 0)
    def _init():
        num_ref[...] = jnp.zeros_like(num_ref)
        den_ref[...] = jnp.zeros_like(den_ref)

    # Logical (unclamped) first global column of this block.  Phantom blocks
    # (possible only on the split path when the column-block count is odd)
    # land entirely past d_total and are masked to zero below.
    base = (s * kb_split + k) * tile_cols

    def _pow_sum(a, b):  # a**p + b**p
        if p_exp == 2:
            return a * a + b * b
        if p_exp == 1:
            return a + b
        if float(p_exp).is_integer() and p_exp > 0:
            e = int(p_exp)

            def _ipow(x):
                r = x
                for _ in range(e - 1):
                    r = r * x
                return r
            return _ipow(a) + _ipow(b)
        af = a.astype(jnp.float32)
        bf = b.astype(jnp.float32)
        return jnp.power(af, p_exp) + jnp.power(bf, p_exp)

    acc_w = num_ref.shape[-1]

    def _chunk(g, masked):
        off = g * chunk_cols
        if not isinstance(off, int):
            off = pl.multiple_of(off, chunk_cols)
        pc = p_ref[:, pl.ds(off, chunk_cols)].astype(compute_dtype)
        tc = t_ref[:, pl.ds(off, chunk_cols)].astype(compute_dtype)
        prod = pc * tc
        den = _pow_sum(pc, tc)
        if masked:
            # Element-granularity mask on the results: masked elements
            # contribute exactly 0 for any p, and garbage read from the
            # ragged / phantom tail is inert.
            col = base + g * chunk_cols + jax.lax.broadcasted_iota(
                jnp.int32, pc.shape, 1)
            valid = col < d_total
            prod = jnp.where(valid, prod, 0)
            den = jnp.where(valid, den, 0)
        # Fold chunk_cols -> acc_w with 128-aligned lane slices: pure VPU adds,
        # no cross-lane (XLU) work in the hot loop.
        pf = prod[:, 0:acc_w].astype(jnp.float32)
        df = den[:, 0:acc_w].astype(jnp.float32)
        for q in range(1, chunk_cols // acc_w):
            pf = pf + prod[:, q * acc_w:(q + 1) * acc_w].astype(jnp.float32)
            df = df + den[:, q * acc_w:(q + 1) * acc_w].astype(jnp.float32)
        num_ref[...] += pf
        den_ref[...] += df

    def _run(masked):
        if n_chunks <= 8:
            for g in range(n_chunks):
                _chunk(g, masked)
        else:
            def body(g, carry):
                _chunk(g, masked)
                return carry
            jax.lax.fori_loop(0, n_chunks, body, 0, unroll=8)

    is_ragged = base + tile_cols > d_total

    @pl.when(jnp.logical_not(is_ragged))
    def _full_block():       # fast path: no mask overhead on full blocks
        _run(False)

    @pl.when(is_ragged)
    def _ragged_block():     # last real block and/or phantom split block
        _run(True)


def binary_dice_loss(predict, target, *, smooth=1.0, p=2, reduction="mean",
                     block_budget_bytes=None):
    assert predict.shape[0] == target.shape[0], \
        "predict & target batch size don't match"
    if reduction not in ("mean", "sum", "none"):
        raise Exception("Unexpected reduction {}".format(reduction))

    n = predict.shape[0]
    pf = predict.reshape(n, -1)      # free metadata reshape; original dtype
    tf = target.reshape(n, -1)
    d = pf.shape[1]

    auto_budget, vmem_limit = _budgets()
    budget = int(block_budget_bytes) if block_budget_bytes else auto_budget
    itemsize = max(jnp.dtype(pf.dtype).itemsize, jnp.dtype(tf.dtype).itemsize)
    compute_dtype = _compute_dtype(pf.dtype, tf.dtype)

    # ---- sample blocking: bn samples per grid step --------------------------
    d128 = _round_up(d, _LANE)
    bytes_per_sample = d128 * itemsize
    bn_cap = max(8, budget // (_LANE * 16))   # keep f32 accumulator blocks modest
    bn = min(n, max(1, budget // bytes_per_sample), bn_cap)
    if bn < n:
        bn = _round_down(bn, 8)               # blockable: multiple of 8 (or == n)
        if bn == 0:
            bn = min(8, n)
    nb = _cdiv(n, bn)
    n_pad = nb * bn

    # ---- column blocking -----------------------------------------------------
    if d <= _LANE:
        tile_cols = d                         # full-dim block (always legal)
        acc_w = d
        chunk_cols = d
    else:
        col_cap = d if d % _LANE == 0 else _round_down(d, _LANE)
        tile_cols = max(_LANE, _round_down(budget // (bn * itemsize), _LANE))
        tile_cols = min(tile_cols, col_cap)
        acc_w = _LANE
        chunk_cols = 512 if tile_cols % 512 == 0 else (
            256 if tile_cols % 256 == 0 else _LANE)
    n_chunks = tile_cols // chunk_cols
    c_total = _cdiv(d, tile_cols)

    # ---- v7x core split of the reduction when the batch fits one block ------
    splits = 2 if (nb == 1 and c_total >= 2) else 1
    kb_split = _cdiv(c_total, splits)

    kernel = functools.partial(
        _dice_kernel,
        d_total=d, tile_cols=tile_cols, chunk_cols=chunk_cols,
        n_chunks=n_chunks, kb_split=kb_split, p_exp=p,
        compute_dtype=compute_dtype)

    def in_index(i, s, k):
        # Clamp phantom blocks (split tail) onto a valid block; the kernel's
        # element mask zeroes their contribution.
        return (i, jnp.minimum(s * kb_split + k, c_total - 1))

    def out_index(i, s, k):
        return (s, i, 0)

    out_sds = jax.ShapeDtypeStruct((splits, n_pad, acc_w), jnp.float32)
    bytes_accessed = (pf.size * jnp.dtype(pf.dtype).itemsize
                      + tf.size * jnp.dtype(tf.dtype).itemsize
                      + 2 * splits * n_pad * acc_w * 4)

    num_out, den_out = pl.pallas_call(
        kernel,
        out_shape=(out_sds, out_sds),
        grid_spec=pltpu.PrefetchScalarGridSpec(
            num_scalar_prefetch=0,
            grid=(nb, splits, kb_split),
            in_specs=[
                pl.BlockSpec((bn, tile_cols), in_index),
                pl.BlockSpec((bn, tile_cols), in_index),
            ],
            out_specs=[
                pl.BlockSpec((pl.Squeezed(), bn, acc_w), out_index),
                pl.BlockSpec((pl.Squeezed(), bn, acc_w), out_index),
            ],
        ),
        compiler_params=pltpu.CompilerParams(
            dimension_semantics=("parallel", "parallel", "arbitrary"),
            vmem_limit_bytes=vmem_limit,
        ),
        cost_estimate=pl.CostEstimate(
            flops=6 * n * d, transcendentals=0, bytes_accessed=bytes_accessed),
    )(pf, tf)

    # Tiny wrapper-side epilogue on the (splits, n_pad, acc_w) partial sums.
    num = num_out.sum(axis=(0, 2))[:n] + smooth
    den = den_out.sum(axis=(0, 2))[:n] + smooth
    loss = 1.0 - num / den
    if reduction == "mean":
        return loss.mean()
    if reduction == "sum":
        return loss.sum()
    return loss


def _reference(predict, target, smooth=1.0, p=2, reduction="mean"):
    n = predict.shape[0]
    pf = predict.reshape(n, -1).astype(jnp.float32)
    tf = target.reshape(n, -1).astype(jnp.float32)
    num = jnp.sum(pf * tf, axis=1) + smooth
    den = jnp.sum(pf ** p + tf ** p, axis=1) + smooth
    loss = 1.0 - num / den
    if reduction == "mean":
        return loss.mean()
    if reduction == "sum":
        return loss.sum()
    return loss


if __name__ == "__main__":
    key = jax.random.PRNGKey(0)
    keys = jax.random.split(key, 10)

    def _check(pred, targ, red, **kw):
        got = jax.block_until_ready(
            binary_dice_loss(pred, targ, smooth=1.0, p=2, reduction=red, **kw))
        ref = _reference(pred, targ, 1.0, 2, red)
        assert jnp.allclose(got, ref, atol=1e-5, rtol=1e-5), (red, got, ref)

    # Test 1: canonical NCHW input, 128-aligned feature dim.
    predict = jax.nn.sigmoid(jax.random.normal(keys[0], (2, 4, 16, 16), jnp.float32))
    target = (jax.random.uniform(keys[1], (2, 4, 16, 16)) > 0.5).astype(jnp.float32)
    _check(predict, target, "mean")
    _check(predict, target, "none")

    # Test 2: ragged feature dim (D % 128 != 0), odd batch -> element-mask + split path.
    p2 = jax.nn.sigmoid(jax.random.normal(keys[2], (3, 3, 7, 9), jnp.float32))
    t2 = (jax.random.uniform(keys[3], (3, 3, 7, 9)) > 0.5).astype(jnp.float32)
    _check(p2, t2, "none")

    # Test 3: single-sample batch with a tiny block budget -> 2-way reduction
    # split with a ragged block and a phantom (clamped + fully masked) block.
    p3 = jax.nn.sigmoid(jax.random.normal(keys[4], (1, 4, 40, 40), jnp.float32))
    t3 = (jax.random.uniform(keys[5], (1, 4, 40, 40)) > 0.5).astype(jnp.float32)
    _check(p3, t3, "mean", block_budget_bytes=2560 * 4)

    # Test 4: many lane chunks per block -> in-kernel fori_loop path.
    p4 = jax.nn.sigmoid(jax.random.normal(keys[6], (2, 4, 48, 48), jnp.float32))
    t4 = (jax.random.uniform(keys[7], (2, 4, 48, 48)) > 0.5).astype(jnp.float32)
    _check(p4, t4, "sum", block_budget_bytes=2 * 9216 * 4)

    # Test 5: batch larger than one sample block -> multiple sample blocks with
    # a padded (garbage, discarded) tail block.
    p5 = jax.nn.sigmoid(jax.random.normal(keys[8], (20, 4, 16, 16), jnp.float32))
    t5 = (jax.random.uniform(keys[9], (20, 4, 16, 16)) > 0.5).astype(jnp.float32)
    _check(p5, t5, "none", block_budget_bytes=16384)

    print("KERNEL_OK")
</pallas_src>

<mosaic_0001>
module attributes {stable_mosaic.version = 11 : i64} {
  func.func @_dice_kernel(%arg0: i32, %arg1: i32, %arg2: i32, %arg3: memref<2x1024xf32, #tpu.memory_space<vmem>>, %arg4: memref<2x1024xf32, #tpu.memory_space<vmem>>, %arg5: memref<1x2x128xf32, #tpu.memory_space<vmem>>, %arg6: memref<1x2x128xf32, #tpu.memory_space<vmem>>) attributes {dimension_semantics = [#tpu.dimension_semantics<parallel>, #tpu.dimension_semantics<parallel>, #tpu.dimension_semantics<arbitrary>], iteration_bounds = array<i64: 1, 1, 1>, scalar_prefetch = 0 : i64, scratch_operands = 0 : i64, tpu.core_type = #tpu.core_type<tc>, window_params = [{transform_indices = @transform_0, window_bounds = array<i64: 2, 1024>}, {transform_indices = @transform_1, window_bounds = array<i64: 2, 1024>}, {transform_indices = @transform_2, window_bounds = array<i64: 1, 2, 128>}, {transform_indices = @transform_3, window_bounds = array<i64: 1, 2, 128>}]} {
    %c0_i32 = arith.constant 0 : i32
    %0 = arith.cmpi eq, %arg2, %c0_i32 : i32
    %1 = arith.extui %0 : i1 to i32
    %c0_i32_0 = arith.constant 0 : i32
    %2 = arith.cmpi ne, %1, %c0_i32_0 : i32
    scf.if %2 {
      %cst = arith.constant 0.000000e+00 : f32
      %13 = vector.broadcast %cst : f32 to vector<2x128xf32>
      %c0 = arith.constant 0 : index
      %c0_5 = arith.constant 0 : index
      %c0_6 = arith.constant 0 : index
      %14 = vector.load %arg5[%c0, %c0_5, %c0_6] : memref<1x2x128xf32, #tpu.memory_space<vmem>>, vector<1x2x128xf32>
      %15 = vector.shape_cast %14 : vector<1x2x128xf32> to vector<2x128xf32>
      %16 = vector.shape_cast %13 : vector<2x128xf32> to vector<1x2x128xf32>
      tpu.vector_store %arg5[%c0, %c0_5, %c0_6], %16 {strides = array<i32>} : memref<1x2x128xf32, #tpu.memory_space<vmem>>, vector<1x2x128xf32>,
      %cst_7 = arith.constant 0.000000e+00 : f32
      %17 = vector.broadcast %cst_7 : f32 to vector<2x128xf32>
      %c0_8 = arith.constant 0 : index
      %c0_9 = arith.constant 0 : index
      %c0_10 = arith.constant 0 : index
      %18 = vector.load %arg6[%c0_8, %c0_9, %c0_10] : memref<1x2x128xf32, #tpu.memory_space<vmem>>, vector<1x2x128xf32>
      %19 = vector.shape_cast %18 : vector<1x2x128xf32> to vector<2x128xf32>
      %20 = vector.shape_cast %17 : vector<2x128xf32> to vector<1x2x128xf32>
      tpu.vector_store %arg6[%c0_8, %c0_9, %c0_10], %20 {strides = array<i32>} : memref<1x2x128xf32, #tpu.memory_space<vmem>>, vector<1x2x128xf32>,
    } else {
    }
    %c1_i32 = arith.constant 1 : i32
    %3 = arith.muli %arg1, %c1_i32 : i32
    %4 = arith.addi %3, %arg2 : i32
    %c1024_i32 = arith.constant 1024 : i32
    %5 = arith.muli %4, %c1024_i32 : i32
    %c1024_i32_1 = arith.constant 1024 : i32
    %6 = arith.addi %5, %c1024_i32_1 : i32
    %c1024_i32_2 = arith.constant 1024 : i32
    %7 = arith.cmpi sgt, %6, %c1024_i32_2 : i32
    %true = arith.constant true
    %8 = arith.xori %7, %true : i1
    %9 = arith.extui %8 : i1 to i32
    %c0_i32_3 = arith.constant 0 : i32
    %10 = arith.cmpi ne, %9, %c0_i32_3 : i32
    scf.if %10 {
      %c0 = arith.constant 0 : index
      %c0_5 = arith.constant 0 : index
      %13 = vector.load %arg3[%c0, %c0_5] : memref<2x1024xf32, #tpu.memory_space<vmem>>, vector<2x512xf32>
      %c0_6 = arith.constant 0 : index
      %c0_7 = arith.constant 0 : index
      %14 = vector.load %arg4[%c0_6, %c0_7] : memref<2x1024xf32, #tpu.memory_space<vmem>>, vector<2x512xf32>
      %15 = arith.mulf %13, %14 : vector<2x512xf32>
      %16 = arith.mulf %13, %13 : vector<2x512xf32>
      %17 = arith.mulf %14, %14 : vector<2x512xf32>
      %18 = arith.addf %16, %17 : vector<2x512xf32>
      %19 = vector.extract_strided_slice %15 {offsets = [0, 0], sizes = [2, 128], strides = [1, 1]} : vector<2x512xf32> to vector<2x128xf32>
      %20 = vector.extract_strided_slice %18 {offsets = [0, 0], sizes = [2, 128], strides = [1, 1]} : vector<2x512xf32> to vector<2x128xf32>
      %21 = vector.extract_strided_slice %15 {offsets = [0, 128], sizes = [2, 128], strides = [1, 1]} : vector<2x512xf32> to vector<2x128xf32>
      %22 = arith.addf %19, %21 : vector<2x128xf32>
      %23 = vector.extract_strided_slice %18 {offsets = [0, 128], sizes = [2, 128], strides = [1, 1]} : vector<2x512xf32> to vector<2x128xf32>
      %24 = arith.addf %20, %23 : vector<2x128xf32>
      %25 = vector.extract_strided_slice %15 {offsets = [0, 256], sizes = [2, 128], strides = [1, 1]} : vector<2x512xf32> to vector<2x128xf32>
      %26 = arith.addf %22, %25 : vector<2x128xf32>
      %27 = vector.extract_strided_slice %18 {offsets = [0, 256], sizes = [2, 128], strides = [1, 1]} : vector<2x512xf32> to vector<2x128xf32>
      %28 = arith.addf %24, %27 : vector<2x128xf32>
      %29 = vector.extract_strided_slice %15 {offsets = [0, 384], sizes = [2, 128], strides = [1, 1]} : vector<2x512xf32> to vector<2x128xf32>
      %30 = arith.addf %26, %29 : vector<2x128xf32>
      %31 = vector.extract_strided_slice %18 {offsets = [0, 384], sizes = [2, 128], strides = [1, 1]} : vector<2x512xf32> to vector<2x128xf32>
      %32 = arith.addf %28, %31 : vector<2x128xf32>
      %c0_8 = arith.constant 0 : index
      %c0_9 = arith.constant 0 : index
      %c0_10 = arith.constant 0 : index
      %33 = vector.load %arg5[%c0_8, %c0_9, %c0_10] : memref<1x2x128xf32, #tpu.memory_space<vmem>>, vector<1x2x128xf32>
      %34 = vector.shape_cast %33 : vector<1x2x128xf32> to vector<2x128xf32>
      %35 = arith.addf %34, %30 : vector<2x128xf32>
      %c0_11 = arith.constant 0 : index
      %c0_12 = arith.constant 0 : index
      %c0_13 = arith.constant 0 : index
      %36 = vector.load %arg5[%c0_11, %c0_12, %c0_13] : memref<1x2x128xf32, #tpu.memory_space<vmem>>, vector<1x2x128xf32>
      %37 = vector.shape_cast %36 : vector<1x2x128xf32> to vector<2x128xf32>
      %38 = vector.shape_cast %35 : vector<2x128xf32> to vector<1x2x128xf32>
      tpu.vector_store %arg5[%c0_11, %c0_12, %c0_13], %38 {strides = array<i32>} : memref<1x2x128xf32, #tpu.memory_space<vmem>>, vector<1x2x128xf32>,
      %c0_14 = arith.constant 0 : index
      %c0_15 = arith.constant 0 : index
      %c0_16 = arith.constant 0 : index
      %39 = vector.load %arg6[%c0_14, %c0_15, %c0_16] : memref<1x2x128xf32, #tpu.memory_space<vmem>>, vector<1x2x128xf32>
      %40 = vector.shape_cast %39 : vector<1x2x128xf32> to vector<2x128xf32>
      %41 = arith.addf %40, %32 : vector<2x128xf32>
      %c0_17 = arith.constant 0 : index
      %c0_18 = arith.constant 0 : index
      %c0_19 = arith.constant 0 : index
      %42 = vector.load %arg6[%c0_17, %c0_18, %c0_19] : memref<1x2x128xf32, #tpu.memory_space<vmem>>, vector<1x2x128xf32>
      %43 = vector.shape_cast %42 : vector<1x2x128xf32> to vector<2x128xf32>
      %44 = vector.shape_cast %41 : vector<2x128xf32> to vector<1x2x128xf32>
      tpu.vector_store %arg6[%c0_17, %c0_18, %c0_19], %44 {strides = array<i32>} : memref<1x2x128xf32, #tpu.memory_space<vmem>>, vector<1x2x128xf32>,
      %c0_20 = arith.constant 0 : index
      %c512 = arith.constant 512 : index
      %45 = vector.load %arg3[%c0_20, %c512] : memref<2x1024xf32, #tpu.memory_space<vmem>>, vector<2x512xf32>
      %c0_21 = arith.constant 0 : index
      %c512_22 = arith.constant 512 : index
      %46 = vector.load %arg4[%c0_21, %c512_22] : memref<2x1024xf32, #tpu.memory_space<vmem>>, vector<2x512xf32>
      %47 = arith.mulf %45, %46 : vector<2x512xf32>
      %48 = arith.mulf %45, %45 : vector<2x512xf32>
      %49 = arith.mulf %46, %46 : vector<2x512xf32>
      %50 = arith.addf %48, %49 : vector<2x512xf32>
      %51 = vector.extract_strided_slice %47 {offsets = [0, 0], sizes = [2, 128], strides = [1, 1]} : vector<2x512xf32> to vector<2x128xf32>
      %52 = vector.extract_strided_slice %50 {offsets = [0, 0], sizes = [2, 128], strides = [1, 1]} : vector<2x512xf32> to vector<2x128xf32>
      %53 = vector.extract_strided_slice %47 {offsets = [0, 128], sizes = [2, 128], strides = [1, 1]} : vector<2x512xf32> to vector<2x128xf32>
      %54 = arith.addf %51, %53 : vector<2x128xf32>
      %55 = vector.extract_strided_slice %50 {offsets = [0, 128], sizes = [2, 128], strides = [1, 1]} : vector<2x512xf32> to vector<2x128xf32>
      %56 = arith.addf %52, %55 : vector<2x128xf32>
      %57 = vector.extract_strided_slice %47 {offsets = [0, 256], sizes = [2, 128], strides = [1, 1]} : vector<2x512xf32> to vector<2x128xf32>
      %58 = arith.addf %54, %57 : vector<2x128xf32>
      %59 = vector.extract_strided_slice %50 {offsets = [0, 256], sizes = [2, 128], strides = [1, 1]} : vector<2x512xf32> to vector<2x128xf32>
      %60 = arith.addf %56, %59 : vector<2x128xf32>
      %61 = vector.extract_strided_slice %47 {offsets = [0, 384], sizes = [2, 128], strides = [1, 1]} : vector<2x512xf32> to vector<2x128xf32>
      %62 = arith.addf %58, %61 : vector<2x128xf32>
      %63 = vector.extract_strided_slice %50 {offsets = [0, 384], sizes = [2, 128], strides = [1, 1]} : vector<2x512xf32> to vector<2x128xf32>
      %64 = arith.addf %60, %63 : vector<2x128xf32>
      %c0_23 = arith.constant 0 : index
      %c0_24 = arith.constant 0 : index
      %c0_25 = arith.constant 0 : index
      %65 = vector.load %arg5[%c0_23, %c0_24, %c0_25] : memref<1x2x128xf32, #tpu.memory_space<vmem>>, vector<1x2x128xf32>
      %66 = vector.shape_cast %65 : vector<1x2x128xf32> to vector<2x128xf32>
      %67 = arith.addf %66, %62 : vector<2x128xf32>
      %c0_26 = arith.constant 0 : index
      %c0_27 = arith.constant 0 : index
      %c0_28 = arith.constant 0 : index
      %68 = vector.load %arg5[%c0_26, %c0_27, %c0_28] : memref<1x2x128xf32, #tpu.memory_space<vmem>>, vector<1x2x128xf32>
      %69 = vector.shape_cast %68 : vector<1x2x128xf32> to vector<2x128xf32>
      %70 = vector.shape_cast %67 : vector<2x128xf32> to vector<1x2x128xf32>
      tpu.vector_store %arg5[%c0_26, %c0_27, %c0_28], %70 {strides = array<i32>} : memref<1x2x128xf32, #tpu.memory_space<vmem>>, vector<1x2x128xf32>,
      %c0_29 = arith.constant 0 : index
      %c0_30 = arith.constant 0 : index
      %c0_31 = arith.constant 0 : index
      %71 = vector.load %arg6[%c0_29, %c0_30, %c0_31] : memref<1x2x128xf32, #tpu.memory_space<vmem>>, vector<1x2x128xf32>
      %72 = vector.shape_cast %71 : vector<1x2x128xf32> to vector<2x128xf32>
      %73 = arith.addf %72, %64 : vector<2x128xf32>
      %c0_32 = arith.constant 0 : index
      %c0_33 = arith.constant 0 : index
      %c0_34 = arith.constant 0 : index
      %74 = vector.load %arg6[%c0_32, %c0_33, %c0_34] : memref<1x2x128xf32, #tpu.memory_space<vmem>>, vector<1x2x128xf32>
      %75 = vector.shape_cast %74 : vector<1x2x128xf32> to vector<2x128xf32>
      %76 = vector.shape_cast %73 : vector<2x128xf32> to vector<1x2x128xf32>
      tpu.vector_store %arg6[%c0_32, %c0_33, %c0_34], %76 {strides = array<i32>} : memref<1x2x128xf32, #tpu.memory_space<vmem>>, vector<1x2x128xf32>,
    } else {
    }
    %11 = arith.extui %7 : i1 to i32
    %c0_i32_4 = arith.constant 0 : i32
    %12 = arith.cmpi ne, %11, %c0_i32_4 : i32
    scf.if %12 {
      %c0 = arith.constant 0 : index
      %c0_5 = arith.constant 0 : index
      %13 = vector.load %arg3[%c0, %c0_5] : memref<2x1024xf32, #tpu.memory_space<vmem>>, vector<2x512xf32>
      %c0_6 = arith.constant 0 : index
      %c0_7 = arith.constant 0 : index
      %14 = vector.load %arg4[%c0_6, %c0_7] : memref<2x1024xf32, #tpu.memory_space<vmem>>, vector<2x512xf32>
      %15 = arith.mulf %13, %14 : vector<2x512xf32>
      %16 = arith.mulf %13, %13 : vector<2x512xf32>
      %17 = arith.mulf %14, %14 : vector<2x512xf32>
      %18 = arith.addf %16, %17 : vector<2x512xf32>
      %c0_i32_8 = arith.constant 0 : i32
      %19 = arith.addi %5, %c0_i32_8 : i32
      %20 = tpu.iota {dimensions = array<i32: 1>} : vector<2x512xi32>
      %21 = vector.broadcast %19 : i32 to vector<2x512xi32>
      %22 = arith.addi %21, %20 : vector<2x512xi32>
      %c1024_i32_9 = arith.constant 1024 : i32
      %23 = vector.broadcast %c1024_i32_9 : i32 to vector<2x512xi32>
      %24 = arith.cmpi slt, %22, %23 : vector<2x512xi32>
      %c0_i32_10 = arith.constant 0 : i32
      %25 = arith.sitofp %c0_i32_10 : i32 to f32
      %26 = vector.broadcast %25 : f32 to vector<2x512xf32>
      %27 = arith.select %24, %15, %26 : vector<2x512xi1>, vector<2x512xf32>
      %c0_i32_11 = arith.constant 0 : i32
      %28 = arith.sitofp %c0_i32_11 : i32 to f32
      %29 = vector.broadcast %28 : f32 to vector<2x512xf32>
      %30 = arith.select %24, %18, %29 : vector<2x512xi1>, vector<2x512xf32>
      %31 = vector.extract_strided_slice %27 {offsets = [0, 0], sizes = [2, 128], strides = [1, 1]} : vector<2x512xf32> to vector<2x128xf32>
      %32 = vector.extract_strided_slice %30 {offsets = [0, 0], sizes = [2, 128], strides = [1, 1]} : vector<2x512xf32> to vector<2x128xf32>
      %33 = vector.extract_strided_slice %27 {offsets = [0, 128], sizes = [2, 128], strides = [1, 1]} : vector<2x512xf32> to vector<2x128xf32>
      %34 = arith.addf %31, %33 : vector<2x128xf32>
      %35 = vector.extract_strided_slice %30 {offsets = [0, 128], sizes = [2, 128], strides = [1, 1]} : vector<2x512xf32> to vector<2x128xf32>
      %36 = arith.addf %32, %35 : vector<2x128xf32>
      %37 = vector.extract_strided_slice %27 {offsets = [0, 256], sizes = [2, 128], strides = [1, 1]} : vector<2x512xf32> to vector<2x128xf32>
      %38 = arith.addf %34, %37 : vector<2x128xf32>
      %39 = vector.extract_strided_slice %30 {offsets = [0, 256], sizes = [2, 128], strides = [1, 1]} : vector<2x512xf32> to vector<2x128xf32>
      %40 = arith.addf %36, %39 : vector<2x128xf32>
      %41 = vector.extract_strided_slice %27 {offsets = [0, 384], sizes = [2, 128], strides = [1, 1]} : vector<2x512xf32> to vector<2x128xf32>
      %42 = arith.addf %38, %41 : vector<2x128xf32>
      %43 = vector.extract_strided_slice %30 {offsets = [0, 384], sizes = [2, 128], strides = [1, 1]} : vector<2x512xf32> to vector<2x128xf32>
      %44 = arith.addf %40, %43 : vector<2x128xf32>
      %c0_12 = arith.constant 0 : index
      %c0_13 = arith.constant 0 : index
      %c0_14 = arith.constant 0 : index
      %45 = vector.load %arg5[%c0_12, %c0_13, %c0_14] : memref<1x2x128xf32, #tpu.memory_space<vmem>>, vector<1x2x128xf32>
      %46 = vector.shape_cast %45 : vector<1x2x128xf32> to vector<2x128xf32>
      %47 = arith.addf %46, %42 : vector<2x128xf32>
      %c0_15 = arith.constant 0 : index
      %c0_16 = arith.constant 0 : index
      %c0_17 = arith.constant 0 : index
      %48 = vector.load %arg5[%c0_15, %c0_16, %c0_17] : memref<1x2x128xf32, #tpu.memory_space<vmem>>, vector<1x2x128xf32>
      %49 = vector.shape_cast %48 : vector<1x2x128xf32> to vector<2x128xf32>
      %50 = vector.shape_cast %47 : vector<2x128xf32> to vector<1x2x128xf32>
      tpu.vector_store %arg5[%c0_15, %c0_16, %c0_17], %50 {strides = array<i32>} : memref<1x2x128xf32, #tpu.memory_space<vmem>>, vector<1x2x128xf32>,
      %c0_18 = arith.constant 0 : index
      %c0_19 = arith.constant 0 : index
      %c0_20 = arith.constant 0 : index
      %51 = vector.load %arg6[%c0_18, %c0_19, %c0_20] : memref<1x2x128xf32, #tpu.memory_space<vmem>>, vector<1x2x128xf32>
      %52 = vector.shape_cast %51 : vector<1x2x128xf32> to vector<2x128xf32>
      %53 = arith.addf %52, %44 : vector<2x128xf32>
      %c0_21 = arith.constant 0 : index
      %c0_22 = arith.constant 0 : index
      %c0_23 = arith.constant 0 : index
      %54 = vector.load %arg6[%c0_21, %c0_22, %c0_23] : memref<1x2x128xf32, #tpu.memory_space<vmem>>, vector<1x2x128xf32>
      %55 = vector.shape_cast %54 : vector<1x2x128xf32> to vector<2x128xf32>
      %56 = vector.shape_cast %53 : vector<2x128xf32> to vector<1x2x128xf32>
      tpu.vector_store %arg6[%c0_21, %c0_22, %c0_23], %56 {strides = array<i32>} : memref<1x2x128xf32, #tpu.memory_space<vmem>>, vector<1x2x128xf32>,
      %c0_24 = arith.constant 0 : index
      %c512 = arith.constant 512 : index
      %57 = vector.load %arg3[%c0_24, %c512] : memref<2x1024xf32, #tpu.memory_space<vmem>>, vector<2x512xf32>
      %c0_25 = arith.constant 0 : index
      %c512_26 = arith.constant 512 : index
      %58 = vector.load %arg4[%c0_25, %c512_26] : memref<2x1024xf32, #tpu.memory_space<vmem>>, vector<2x512xf32>
      %59 = arith.mulf %57, %58 : vector<2x512xf32>
      %60 = arith.mulf %57, %57 : vector<2x512xf32>
      %61 = arith.mulf %58, %58 : vector<2x512xf32>
      %62 = arith.addf %60, %61 : vector<2x512xf32>
      %c512_i32 = arith.constant 512 : i32
      %63 = arith.addi %5, %c512_i32 : i32
      %64 = tpu.iota {dimensions = array<i32: 1>} : vector<2x512xi32>
      %65 = vector.broadcast %63 : i32 to vector<2x512xi32>
      %66 = arith.addi %65, %64 : vector<2x512xi32>
      %c1024_i32_27 = arith.constant 1024 : i32
      %67 = vector.broadcast %c1024_i32_27 : i32 to vector<2x512xi32>
      %68 = arith.cmpi slt, %66, %67 : vector<2x512xi32>
      %c0_i32_28 = arith.constant 0 : i32
      %69 = arith.sitofp %c0_i32_28 : i32 to f32
      %70 = vector.broadcast %69 : f32 to vector<2x512xf32>
      %71 = arith.select %68, %59, %70 : vector<2x512xi1>, vector<2x512xf32>
      %c0_i32_29 = arith.constant 0 : i32
      %72 = arith.sitofp %c0_i32_29 : i32 to f32
      %73 = vector.broadcast %72 : f32 to vector<2x512xf32>
      %74 = arith.select %68, %62, %73 : vector<2x512xi1>, vector<2x512xf32>
      %75 = vector.extract_strided_slice %71 {offsets = [0, 0], sizes = [2, 128], strides = [1, 1]} : vector<2x512xf32> to vector<2x128xf32>
      %76 = vector.extract_strided_slice %74 {offsets = [0, 0], sizes = [2, 128], strides = [1, 1]} : vector<2x512xf32> to vector<2x128xf32>
      %77 = vector.extract_strided_slice %71 {offsets = [0, 128], sizes = [2, 128], strides = [1, 1]} : vector<2x512xf32> to vector<2x128xf32>
      %78 = arith.addf %75, %77 : vector<2x128xf32>
      %79 = vector.extract_strided_slice %74 {offsets = [0, 128], sizes = [2, 128], strides = [1, 1]} : vector<2x512xf32> to vector<2x128xf32>
      %80 = arith.addf %76, %79 : vector<2x128xf32>
      %81 = vector.extract_strided_slice %71 {offsets = [0, 256], sizes = [2, 128], strides = [1, 1]} : vector<2x512xf32> to vector<2x128xf32>
      %82 = arith.addf %78, %81 : vector<2x128xf32>
      %83 = vector.extract_strided_slice %74 {offsets = [0, 256], sizes = [2, 128], strides = [1, 1]} : vector<2x512xf32> to vector<2x128xf32>
      %84 = arith.addf %80, %83 : vector<2x128xf32>
      %85 = vector.extract_strided_slice %71 {offsets = [0, 384], sizes = [2, 128], strides = [1, 1]} : vector<2x512xf32> to vector<2x128xf32>
      %86 = arith.addf %82, %85 : vector<2x128xf32>
      %87 = vector.extract_strided_slice %74 {offsets = [0, 384], sizes = [2, 128], strides = [1, 1]} : vector<2x512xf32> to vector<2x128xf32>
      %88 = arith.addf %84, %87 : vector<2x128xf32>
      %c0_30 = arith.constant 0 : index
      %c0_31 = arith.constant 0 : index
      %c0_32 = arith.constant 0 : index
      %89 = vector.load %arg5[%c0_30, %c0_31, %c0_32] : memref<1x2x128xf32, #tpu.memory_space<vmem>>, vector<1x2x128xf32>
      %90 = vector.shape_cast %89 : vector<1x2x128xf32> to vector<2x128xf32>
      %91 = arith.addf %90, %86 : vector<2x128xf32>
      %c0_33 = arith.constant 0 : index
      %c0_34 = arith.constant 0 : index
      %c0_35 = arith.constant 0 : index
      %92 = vector.load %arg5[%c0_33, %c0_34, %c0_35] : memref<1x2x128xf32, #tpu.memory_space<vmem>>, vector<1x2x128xf32>
      %93 = vector.shape_cast %92 : vector<1x2x128xf32> to vector<2x128xf32>
      %94 = vector.shape_cast %91 : vector<2x128xf32> to vector<1x2x128xf32>
      tpu.vector_store %arg5[%c0_33, %c0_34, %c0_35], %94 {strides = array<i32>} : memref<1x2x128xf32, #tpu.memory_space<vmem>>, vector<1x2x128xf32>,
      %c0_36 = arith.constant 0 : index
      %c0_37 = arith.constant 0 : index
      %c0_38 = arith.constant 0 : index
      %95 = vector.load %arg6[%c0_36, %c0_37, %c0_38] : memref<1x2x128xf32, #tpu.memory_space<vmem>>, vector<1x2x128xf32>
      %96 = vector.shape_cast %95 : vector<1x2x128xf32> to vector<2x128xf32>
      %97 = arith.addf %96, %88 : vector<2x128xf32>
      %c0_39 = arith.constant 0 : index
      %c0_40 = arith.constant 0 : index
      %c0_41 = arith.constant 0 : index
      %98 = vector.load %arg6[%c0_39, %c0_40, %c0_41] : memref<1x2x128xf32, #tpu.memory_space<vmem>>, vector<1x2x128xf32>
      %99 = vector.shape_cast %98 : vector<1x2x128xf32> to vector<2x128xf32>
      %100 = vector.shape_cast %97 : vector<2x128xf32> to vector<1x2x128xf32>
      tpu.vector_store %arg6[%c0_39, %c0_40, %c0_41], %100 {strides = array<i32>} : memref<1x2x128xf32, #tpu.memory_space<vmem>>, vector<1x2x128xf32>,
    } else {
    }
    return
  }
  func.func @transform_0(%arg0: i32, %arg1: i32, %arg2: i32) -> (i32, i32) {
    %c1_i32 = arith.constant 1 : i32
    %0 = arith.muli %arg1, %c1_i32 : i32
    %1 = arith.addi %0, %arg2 : i32
    %c0_i32 = arith.constant 0 : i32
    %2 = arith.minsi %1, %c0_i32 : i32
    %c0_i32_0 = arith.constant 0 : i32
    return %arg0, %2 : i32, i32
  }
  func.func @transform_1(%arg0: i32, %arg1: i32, %arg2: i32) -> (i32, i32) {
    %c1_i32 = arith.constant 1 : i32
    %0 = arith.muli %arg1, %c1_i32 : i32
    %1 = arith.addi %0, %arg2 : i32
    %c0_i32 = arith.constant 0 : i32
    %2 = arith.minsi %1, %c0_i32 : i32
    %c0_i32_0 = arith.constant 0 : i32
    return %arg0, %2 : i32, i32
  }
  func.func @transform_2(%arg0: i32, %arg1: i32, %arg2: i32) -> (i32, i32, i32) {
    %c0_i32 = arith.constant 0 : i32
    %c0_i32_0 = arith.constant 0 : i32
    return %arg1, %arg0, %c0_i32 : i32, i32, i32
  }
  func.func @transform_3(%arg0: i32, %arg1: i32, %arg2: i32) -> (i32, i32, i32) {
    %c0_i32 = arith.constant 0 : i32
    %c0_i32_0 = arith.constant 0 : i32
    return %arg1, %arg0, %c0_i32 : i32, i32, i32
  }
}

</mosaic_0001>

<bundles_post_ra>
// kernel: tpu_custom_call.1
= control target key start
LH: loop header
LB: loop body
LE: loop exit
PB: predicated region body
PF: predicated region fallthrough
CT: control target
= control target key end

     0   :  { %9 = vsyncpa [#allocation3], 0  ;;  %s512_s0 = inlined_call_operand.hbm [shape: f32[2,1024], index: 0, kind: input, shape index: {}]   ;;  %s513_s1 = inlined_call_operand.hbm [shape: f32[2,1024], index: 1, kind: input, shape index: {}]   ;;  %s514_s2 = inlined_call_operand.hbm [shape: f32[1,2,128], index: 2, kind: output, shape index: {0}]   ;;  %s515_s3 = inlined_call_operand.hbm [shape: f32[1,2,128], index: 3, kind: output, shape index: {1}]  }
   0x1   :  { %10 = vsyncpa [#allocation6], 0 }
   0x2   :  { %11 = vsyncpa [#allocation4], 0 }
   0x3   :  { %12 = vsyncpa [#allocation9], 0  ;;  %s439_s12 = smov [#allocation2]   ;;  %s440_s14 = smov [#allocation5]  }
   0x4   :  { %s25_s13 = sshll.u32 %s439_s12, 4  ;;  %s41_s15 = sshll.u32 %s440_s14, 4  ;;  %s26_s13 = int_to_ptr.vmem [resolvable:$true] %s25_s13  ;;  %s42_s15 = int_to_ptr.vmem [resolvable:$true] %s41_s15 }
   0x5   :  { %s343_s18 = scalar_lea.hbm %s512_s0, 256 }
   0x6   :  { %p344_p0 = scmp.ne.s32.totalorder %s512_s0, %s343_s18  ;;  %p347_p1 = scmp.lt.u32.totalorder %s343_s18, %s512_s0 }
   0x8   :  { %p349_p2 = pnand %p347_p1, %p344_p0 }
   0xa   :  { %352 = shalt.err (!%p349_p2)
}
   0xb   :  { %s353_s23 = scalar_lea.vmem %s26_s13, 256  ;;  %p358_p4 = scmp.lt.s32.totalorder %s26_s13, %s26_s13 }
   0xc   :  { %p354_p3 = scmp.ne.s32.totalorder %s26_s13, %s353_s23  ;;  %p359_p5 = scmp.lt.s32.totalorder %s353_s23, %s353_s23 }
   0xe   :  { %p360_p6 = por %p359_p5, %p358_p4 }
  0x10   :  { %p361_p7 = pnand %p360_p6, %p354_p3 }
  0x12   :  { %364 = shalt.err (!%p361_p7)
}
  0x13   :  { %28 = dma.hbm_to_vmem [thread:$0]  %s512_s0, 256, %s26_s13, [#allocation3]  }
  0x14   :  { %s365_s28 = scalar_lea.hbm %s513_s1, 256 }
  0x15   :  { %p366_p8 = scmp.ne.s32.totalorder %s513_s1, %s365_s28  ;;  %p369_p9 = scmp.lt.u32.totalorder %s365_s28, %s513_s1 }
  0x17   :  { %p371_p10 = pnand %p369_p9, %p366_p8 }
  0x19   :  { %374 = shalt.err (!%p371_p10)
}
  0x1a   :  { %s375_s6 = scalar_lea.vmem %s42_s15, 256  ;;  %p380_p12 = scmp.lt.s32.totalorder %s42_s15, %s42_s15 }
  0x1b   :  { %p376_p11 = scmp.ne.s32.totalorder %s42_s15, %s375_s6  ;;  %p381_p13 = scmp.lt.s32.totalorder %s375_s6, %s375_s6 }
  0x1d   :  { %p382_p0 = por %p381_p13, %p380_p12 }
  0x1f   :  { %p383_p1 = pnand %p382_p0, %p376_p11 }
  0x21   :  { %386 = shalt.err (!%p383_p1)
}
  0x22   :  { %44 = dma.hbm_to_vmem [thread:$0]  %s513_s1, 256, %s42_s15, [#allocation6]  }
  0x23   :  { %431 = dma.done.wait [#allocation3], 256  }
  0x24   :  { %432 = vsyncadd [#allocation3], 4294967040 }
  0x25   :  { %433 = dma.done.wait [#allocation6], 256  }
  0x26   :  { %434 = vsyncadd [#allocation6], 4294967040  ;;  %v441_v0 = vmov 0.0   ;;  %v73_v1 = vld [vmem:[#allocation2] sm:$0xff]  ;;  %v74_v2 = vld [vmem:[#allocation5] sm:$0xff]  ;;  %s442_s1 = smov [#allocation7]  }
  0x27   :  { %63 = vst [vmem:[#allocation7] sm:$0x3] %v441_v0  ;;  %64 = vst [vmem:[#allocation8] sm:$0x3] %v441_v0  ;;  %v105_v3 = vld [vmem:[#allocation2 + $0x8] sm:$0xff]  ;;  %v75_v4 = vmul.f32 %v74_v2, %v73_v1  ;;  %v76_v5 = vmul.f32 %v73_v1, %v73_v1  ;;  %v77_v6 = vmul.f32 %v74_v2, %v74_v2  ;;  %v106_v7 = vld [vmem:[#allocation5 + $0x8] sm:$0xff] }
  0x28   :  { %v108_v8 = vmul.f32 %v105_v3, %v105_v3  ;;  %v107_v9 = vmul.f32 %v106_v7, %v105_v3  ;;  %v109_v10 = vmul.f32 %v106_v7, %v106_v7  ;;  %s310_s8 = sshll.u32 %s442_s1, 4  ;;  %s443_s9 = smov [#allocation8]   ;;  %s311_s8 = int_to_ptr.vmem [resolvable:$true] %s310_s8 }
  0x29   :  { %v80_v11 = vrot.slane %v75_v4, 2  ;;  %v87_v12 = vrot.slane %v75_v4, 4  ;;  %v78_v13 = vadd.f32 %v77_v6, %v76_v5  ;;  %v93_v14 = vrot.slane %v75_v4, 6  ;;  %s320_s10 = sshll.u32 %s443_s9, 4  ;;  %s387_s11 = scalar_lea.vmem %s311_s8, 32  ;;  %s321_s10 = int_to_ptr.vmem [resolvable:$true] %s320_s10 }
  0x2a   :  { %v110_v15 = vadd.f32 %v109_v10, %v108_v8  ;;  %v112_v19 = vrot.slane %v107_v9, 2  ;;  %v119_v28 = vrot.slane %v107_v9, 4  ;;  %v125_v36 = vrot.slane %v107_v9, 6  ;;  %p388_p2 = scmp.ne.s32.totalorder %s311_s8, %s387_s11  ;;  %p392_p3 = scmp.lt.s32.totalorder %s311_s8, %s311_s8 }
  0x2b   :  { %v82_v16 = vadd.f32 %v80_v11, %v75_v4  ;;  %v84_v17 = vrot.slane %v78_v13, 2  ;;  %v90_v18 = vrot.slane %v78_v13, 4  ;;  %v96_v22 = vrot.slane %v78_v13, 6  ;;  %p393_p4 = scmp.lt.s32.totalorder %s387_s11, %s387_s11 }
  0x2c   :  { %v116_v23 = vrot.slane %v110_v15, 2  ;;  %v114_v27 = vadd.f32 %v112_v19, %v107_v9  ;;  %v122_v33 = vrot.slane %v110_v15, 4  ;;  %v128_v38 = vrot.slane %v110_v15, 6 }
  0x2d   :  { %v89_v20 = vadd.f32 %v87_v12, %v82_v16  ;;  %v86_v21 = vadd.f32 %v84_v17, %v78_v13  ;;  %p394_p5 = por %p393_p4, %p392_p3 }
  0x2e   :  { %v99_v24 = vld [vmem:[#allocation7] sm:$0x3]  ;;  %v102_v29 = vld [vmem:[#allocation8] sm:$0x3]  ;;  %v118_v32 = vadd.f32 %v116_v23, %v110_v15  ;;  %v121_v35 = vadd.f32 %v119_v28, %v114_v27 }
  0x2f   :  { %v95_v25 = vadd.f32 %v93_v14, %v89_v20  ;;  %v92_v26 = vadd.f32 %v90_v18, %v86_v21  ;;  %p395_p6 = pnand %p394_p5, %p388_p2 }
  0x30   :  { %v124_v37 = vadd.f32 %v122_v33, %v118_v32  ;;  %v127_v39 = vadd.f32 %v125_v36, %v121_v35 }
  0x31   :  { %v100_v30 = vadd.f32 %v99_v24, %v95_v25  ;;  %v98_v31 = vadd.f32 %v96_v22, %v92_v26 }
  0x32   :  { %v130_v40 = vadd.f32 %v128_v38, %v124_v37 }
  0x33   :  { %101 = vst [vmem:[#allocation7] sm:$0x3] %v100_v30  ;;  %v103_v34 = vadd.f32 %v102_v29, %v98_v31 }
  0x35   :  { %104 = vst [vmem:[#allocation8] sm:$0x3] %v103_v34 }
  0x3a   :  { %v131_v41 = vld [vmem:[#allocation7] sm:$0x3] }
  0x3b   :  { %v132_v42 = vadd.f32 %v131_v41, %v127_v39 }
  0x3c   :  { %v134_v43 = vld [vmem:[#allocation8] sm:$0x3] }
  0x3d   :  { %133 = vst [vmem:[#allocation7] sm:$0x3] %v132_v42  ;;  %v135_v44 = vadd.f32 %v134_v43, %v130_v40 }
  0x3e   :  { %398 = shalt.err (!%p395_p6)
}
  0x3f   :  { %s399_s14 = scalar_lea.hbm %s514_s2, 32 }
  0x40   :  { %p400_p7 = scmp.ne.s32.totalorder %s514_s2, %s399_s14  ;;  %p403_p8 = scmp.lt.u32.totalorder %s399_s14, %s514_s2 }
  0x42   :  { %p405_p9 = pnand %p403_p8, %p400_p7 }
  0x44   :  { %408 = shalt.err (!%p405_p9)
}
  0x45   :  { %313 = dma.vmem_to_hbm [thread:$0]  %s311_s8, 32, %s514_s2, [#allocation4]   ;;  %136 = vst [vmem:[#allocation8] sm:$0x3] %v135_v44 }
  0x46   :  { %s409_s21 = scalar_lea.vmem %s321_s10, 32  ;;  %p414_p11 = scmp.lt.s32.totalorder %s321_s10, %s321_s10 }
  0x47   :  { %p410_p10 = scmp.ne.s32.totalorder %s321_s10, %s409_s21  ;;  %p415_p12 = scmp.lt.s32.totalorder %s409_s21, %s409_s21 }
  0x49   :  { %p416_p13 = por %p415_p12, %p414_p11 }
  0x4b   :  { %p417_p0 = pnand %p416_p13, %p410_p10 }
  0x4d   :  { %420 = shalt.err (!%p417_p0)
}
  0x4e   :  { %s421_s24 = scalar_lea.hbm %s515_s3, 32 }
  0x4f   :  { %p422_p1 = scmp.ne.s32.totalorder %s515_s3, %s421_s24  ;;  %p425_p2 = scmp.lt.u32.totalorder %s421_s24, %s515_s3 }
  0x51   :  { %p427_p3 = pnand %p425_p2, %p422_p1 }
  0x53   :  { %430 = shalt.err (!%p427_p3)
}
  0x54   :  { %323 = dma.vmem_to_hbm [thread:$0]  %s321_s10, 32, %s515_s3, [#allocation9]  }
  0x55   :  { %435 = dma.done.wait [#allocation4], 32  }
  0x56   :  { %436 = vsyncadd [#allocation4], 4294967264 }
  0x57   :  { %437 = dma.done.wait [#allocation9], 32  }
  0x58   :  { %438 = vsyncadd [#allocation9], 4294967264 }
  0x59   :  { %330 = vsyncpa [#allocation3], 1 }
  0x5a   :  { %331 = vsyncpa [#allocation6], 1 }
  0x5b   :  { %332 = vsyncpa [#allocation4], 1 }
  0x5c   :  { %333 = vsyncpa [#allocation9], 1 }

</bundles_post_ra>
